<compile_context>
chip_gen: v6e
topology: v6e:2x2x1
jax: 0.10.0
libtpu: 0.0.40
codegen_flags: <defaults>
</compile_context>

<pallas_src>
import jax
import jax.numpy as jnp
from jax.experimental import pallas as pl
from jax.experimental.pallas import tpu as pltpu


_PV_VPU_MAX_TK = 16  # below this contraction depth, skip the MXU for P@V


def _pv_product(p, v):
    """P @ V for one kv tile.

    p : (bt, tq, tk) f32 probabilities
    v : (bt, tk, D)  values (native dtype)
    Returns f32 (bt, tq, D).
    """
    tk = v.shape[1]
    if tk <= _PV_VPU_MAX_TK:
        # Contraction depth is a tiny fraction of the MXU (8 of 256 lanes on
        # v6e/v7x): an unrolled VPU weighted sum over lane-dense (tq, D) tiles
        # avoids a near-empty systolic pass + push/pop latency.
        vf = v.astype(jnp.float32)
        acc = p[:, :, 0:1] * vf[:, 0:1, :]
        for kk in range(1, tk):
            acc = acc + p[:, :, kk:kk + 1] * vf[:, kk:kk + 1, :]
        return acc
    # Deep contraction: feed the MXU in v's dtype, accumulate in f32.
    return jnp.einsum("bqk,bkd->bqd", p.astype(v.dtype), v,
                      preferred_element_type=jnp.float32)


def sdpa_flash_kernel(scale_ref, q_ref, k_ref, v_ref, o_ref,
                      m_sc, l_sc, acc_sc):
    # scale_ref : SMEM (1,) f32            -- learned scale_factor parameter
    # q_ref     : VMEM (bt, tq, D)
    # k_ref     : VMEM (bt, tk, D)
    # v_ref     : VMEM (bt, tk, D)
    # o_ref     : VMEM (bt, tq, D)
    # m_sc/l_sc : VMEM (bt, tq, 1) f32     -- running max / denominator
    # acc_sc    : VMEM (bt, tq, D) f32     -- running output accumulator
    kv = pl.program_id(2)

    @pl.when(kv == 0)
    def _init():
        m_sc[...] = jnp.full_like(m_sc, -jnp.inf)
        l_sc[...] = jnp.zeros_like(l_sc)
        acc_sc[...] = jnp.zeros_like(acc_sc)

    scale = scale_ref[0]
    q = q_ref[...]          # native dtype; MXU accepts bf16/f32 directly
    k = k_ref[...]
    v = v_ref[...]

    # QK^T as a batched contraction over D (contraction on the last dims ->
    # no explicit k transpose / XLU relayout), f32 accumulation on the MXU.
    # Scaling the (tq, tk) logits is cheaper than re-scaling the (tq, D) q
    # tile on every kv step.
    s = jnp.einsum("bqd,bkd->bqk", q, k,
                   preferred_element_type=jnp.float32) * scale

    # Online (flash) softmax update, statistics kept in f32.
    m_prev = m_sc[...]
    m_new = jnp.maximum(m_prev, jnp.max(s, axis=-1, keepdims=True))
    alpha = jnp.exp(m_prev - m_new)
    p = jnp.exp(s - m_new)

    l_sc[...] = alpha * l_sc[...] + jnp.sum(p, axis=-1, keepdims=True)
    acc_sc[...] = alpha * acc_sc[...] + _pv_product(p, v)
    m_sc[...] = m_new

    # dropout (eval mode) is identity
    # TODO(synk): training-mode dropout (Bernoulli mask + 1/(1-p) rescale)
    # could be added via pltpu.prng_seed / pltpu.prng_random_bits.

    @pl.when(kv == pl.num_programs(2) - 1)
    def _finalize():
        inv_l = pl.reciprocal(l_sc[...], approx=True)   # EUP slot, ~free
        o_ref[...] = (acc_sc[...] * inv_l).astype(o_ref.dtype)


# ----------------------------- tile selection -----------------------------

def _chip_params():
    """(vmem byte budget for the kernel, TensorCores per chip)."""
    kind = ""
    try:
        kind = jax.devices()[0].device_kind.lower()
    except Exception:
        pass
    if "v7" in kind or "7x" in kind:
        # v7x: 64 MiB physical VMEM per TC and 2 TCs/chip -> roughly half the
        # v5e/v6e budget so 2-deep pipelining survives.
        return 28 * 1024 * 1024, 2
    # v5e/v6e (128 MiB physical VMEM, 1 TC). Default scoped limit is 16/32 MiB;
    # we raise it explicitly via vmem_limit_bytes.
    return 64 * 1024 * 1024, 1


def _largest_divisor(n, cap):
    cap = int(min(cap, n))
    for d in range(cap, 0, -1):
        if n % d == 0:
            return d
    return 1


def _seq_tile(length, cap):
    """Full extent if it fits under cap; otherwise the largest divisor that is
    a multiple of 8 (sublane tile).  Falls back to full extent (always legal
    for BlockSpec) if no such divisor exists."""
    if length <= cap:
        return length
    t = (cap // 8) * 8
    while t >= 8:
        if length % t == 0:
            return t
        t -= 8
    return length


def _pick_tiles(B, Lq, Lk, D, itemsize, budget_bytes, num_cores,
                max_tq=None, max_tk=None):
    work_budget = int(budget_bytes * 0.85)

    tq = _seq_tile(Lq, max_tq if max_tq is not None else 512)
    tk = _seq_tile(Lk, max_tk if max_tk is not None else 1024)

    # Per-batch-element VMEM footprint of one grid step:
    #   q, k, v, o blocks double-buffered by the pipeline; f32 scratch
    #   (acc + running max + denom) single-buffered.
    per_b = (2 * tq * D + 2 * 2 * tk * D + 2 * tq * D) * itemsize \
        + (tq * D + 2 * tq) * 4
    bt_cap = max(1, work_budget // per_b)

    if num_cores > 1 and B >= num_cores:
        # Keep the parallel batch axis splittable across both TensorCores.
        bt_cap = min(bt_cap, B // num_cores)
    # Single-TC chips: the largest dividing bt under the budget (fewer, fatter
    # serial grid steps -> less per-step pipeline overhead).
    bt = _largest_divisor(B, bt_cap)
    return bt, tq, tk


# ------------------------------- entry point -------------------------------

def scaled_dot_product_attention(query, key, value, scale_factor, *,
                                 use_bf16_mxu=False, max_tq=None, max_tk=None):
    """query: (B, Lq, D); key/value: (B, Lk, D); scale_factor: scalar param."""
    B, Lq, D = query.shape
    Bk, Lk, Dk = key.shape
    assert (B, D) == (Bk, Dk) and value.shape == key.shape

    out_dtype = query.dtype
    if use_bf16_mxu and query.dtype == jnp.float32:
        # Standard flash-attention tradeoff: bf16 MXU inputs (2-4x MXU rate,
        # half the HBM/VMEM traffic), f32 accumulation + f32 softmax stats.
        query = query.astype(jnp.bfloat16)
        key = key.astype(jnp.bfloat16)
        value = value.astype(jnp.bfloat16)

    itemsize = max(jnp.dtype(query.dtype).itemsize,
                   jnp.dtype(value.dtype).itemsize)
    budget_bytes, num_cores = _chip_params()
    bt, tq, tk = _pick_tiles(B, Lq, Lk, D, itemsize, budget_bytes, num_cores,
                             max_tq=max_tq, max_tk=max_tk)

    scale = jnp.asarray(scale_factor, dtype=jnp.float32).reshape((1,))
    grid = (B // bt, Lq // tq, Lk // tk)

    return pl.pallas_call(
        sdpa_flash_kernel,
        out_shape=jax.ShapeDtypeStruct((B, Lq, D), out_dtype),
        grid=grid,
        in_specs=[
            pl.BlockSpec(memory_space=pltpu.MemorySpace.SMEM),         # scale
            pl.BlockSpec((bt, tq, D), lambda b, qi, ki: (b, qi, 0)),   # query
            pl.BlockSpec((bt, tk, D), lambda b, qi, ki: (b, ki, 0)),   # key
            pl.BlockSpec((bt, tk, D), lambda b, qi, ki: (b, ki, 0)),   # value
        ],
        # Output block fixed along the kv axis -> accumulator-resident;
        # lane-dense last dim (D multiple of 128) avoids masked partial stores.
        out_specs=pl.BlockSpec((bt, tq, D), lambda b, qi, ki: (b, qi, 0)),
        scratch_shapes=[
            pltpu.VMEM((bt, tq, 1), jnp.float32),   # running max
            pltpu.VMEM((bt, tq, 1), jnp.float32),   # running denominator
            pltpu.VMEM((bt, tq, D), jnp.float32),   # output accumulator
        ],
        compiler_params=pltpu.CompilerParams(
            dimension_semantics=("parallel", "parallel", "arbitrary"),
            vmem_limit_bytes=budget_bytes),
    )(scale, query, key, value)


def _reference(query, key, value, scale_factor):
    qk = jnp.einsum("bqd,bkd->bqk", query, key)
    s = qk * scale_factor
    p = jax.nn.softmax(s, axis=-1)
    return jnp.einsum("bqk,bkd->bqd", p, value)


if __name__ == "__main__":
    # Shapes implied by the module's example tensors:
    #   query (1, 24, 512), key/value (1, 8, 512)
    B, Lq, Lk, D = 1, 24, 8, 512

    rng = jax.random.PRNGKey(0)
    kq, kk, kv = jax.random.split(rng, 3)
    query = jax.random.normal(kq, (B, Lq, D), dtype=jnp.float32)
    key_t = jax.random.normal(kk, (B, Lk, D), dtype=jnp.float32)
    value = jax.random.normal(kv, (B, Lk, D), dtype=jnp.float32)

    # Deterministic parameter init (matches nn.Parameter(0.1))
    scale_factor = 0.1

    out = jax.block_until_ready(
        scaled_dot_product_attention(query, key_t, value, scale_factor))
    ref = _reference(query, key_t, value, scale_factor)
    assert out.shape == (B, Lq, D)
    # Slightly looser tolerance than a pure-f32-divide path because the
    # softmax denominator uses the EUP approximate reciprocal.
    assert jnp.allclose(out, ref, rtol=5e-3, atol=1e-3), "mismatch vs reference"

    # Second check at a still-small shape with the kv tile forced to 8 so the
    # flash-style online-softmax accumulation across >1 kv grid steps runs.
    Lk2 = 16
    kk2, kv2 = jax.random.split(jax.random.PRNGKey(1), 2)
    key2 = jax.random.normal(kk2, (B, Lk2, D), dtype=jnp.float32)
    val2 = jax.random.normal(kv2, (B, Lk2, D), dtype=jnp.float32)
    out2 = jax.block_until_ready(
        scaled_dot_product_attention(query, key2, val2, scale_factor, max_tk=8))
    ref2 = _reference(query, key2, val2, scale_factor)
    assert jnp.allclose(out2, ref2, rtol=5e-3, atol=1e-3), "mismatch (tiled kv)"

    print("KERNEL_OK")
</pallas_src>

<mosaic_0001>
module attributes {stable_mosaic.version = 11 : i64} {
  func.func @sdpa_flash_kernel(%arg0: i32, %arg1: i32, %arg2: i32, %arg3: memref<1xf32, #tpu.memory_space<smem>>, %arg4: memref<1x24x512xf32, #tpu.memory_space<vmem>>, %arg5: memref<1x8x512xf32, #tpu.memory_space<vmem>>, %arg6: memref<1x8x512xf32, #tpu.memory_space<vmem>>, %arg7: memref<1x24x512xf32, #tpu.memory_space<vmem>>, %arg8: memref<1x24x1xf32, #tpu.memory_space<vmem>>, %arg9: memref<1x24x1xf32, #tpu.memory_space<vmem>>, %arg10: memref<1x24x512xf32, #tpu.memory_space<vmem>>) attributes {dimension_semantics = [#tpu.dimension_semantics<parallel>, #tpu.dimension_semantics<parallel>, #tpu.dimension_semantics<arbitrary>], iteration_bounds = array<i64: 1, 1, 1>, scalar_prefetch = 0 : i64, scratch_operands = 3 : i64, tpu.core_type = #tpu.core_type<tc>, window_params = [{transform_indices = @transform_0, window_bounds = array<i64: 1>}, {transform_indices = @transform_1, window_bounds = array<i64: 1, 24, 512>}, {transform_indices = @transform_2, window_bounds = array<i64: 1, 8, 512>}, {transform_indices = @transform_3, window_bounds = array<i64: 1, 8, 512>}, {transform_indices = @transform_4, window_bounds = array<i64: 1, 24, 512>}]} {
    %c0_i32 = arith.constant 0 : i32
    %0 = arith.cmpi eq, %arg2, %c0_i32 : i32
    %1 = arith.extui %0 : i1 to i32
    %c0_i32_0 = arith.constant 0 : i32
    %2 = arith.cmpi ne, %1, %c0_i32_0 : i32
    scf.if %2 {
      %cst_32 = arith.constant 0xFF800000 : f32
      %81 = vector.broadcast %cst_32 : f32 to vector<1x24x1xf32>
      %c0_33 = arith.constant 0 : index
      %c0_34 = arith.constant 0 : index
      %c0_35 = arith.constant 0 : index
      %82 = vector.load %arg8[%c0_33, %c0_34, %c0_35] : memref<1x24x1xf32, #tpu.memory_space<vmem>>, vector<1x24x1xf32>
      tpu.vector_store %arg8[%c0_33, %c0_34, %c0_35], %81 {strides = array<i32>} : memref<1x24x1xf32, #tpu.memory_space<vmem>>, vector<1x24x1xf32>,
      %cst_36 = arith.constant 0.000000e+00 : f32
      %83 = vector.broadcast %cst_36 : f32 to vector<1x24x1xf32>
      %c0_37 = arith.constant 0 : index
      %c0_38 = arith.constant 0 : index
      %c0_39 = arith.constant 0 : index
      %84 = vector.load %arg9[%c0_37, %c0_38, %c0_39] : memref<1x24x1xf32, #tpu.memory_space<vmem>>, vector<1x24x1xf32>
      tpu.vector_store %arg9[%c0_37, %c0_38, %c0_39], %83 {strides = array<i32>} : memref<1x24x1xf32, #tpu.memory_space<vmem>>, vector<1x24x1xf32>,
      %cst_40 = arith.constant 0.000000e+00 : f32
      %85 = vector.broadcast %cst_40 : f32 to vector<1x24x512xf32>
      %c0_41 = arith.constant 0 : index
      %c0_42 = arith.constant 0 : index
      %c0_43 = arith.constant 0 : index
      %86 = vector.load %arg10[%c0_41, %c0_42, %c0_43] : memref<1x24x512xf32, #tpu.memory_space<vmem>>, vector<1x24x512xf32>
      tpu.vector_store %arg10[%c0_41, %c0_42, %c0_43], %85 {strides = array<i32>} : memref<1x24x512xf32, #tpu.memory_space<vmem>>, vector<1x24x512xf32>,
    } else {
    }
    %c0 = arith.constant 0 : index
    %3 = memref.load %arg3[%c0] : memref<1xf32, #tpu.memory_space<smem>>
    %c0_1 = arith.constant 0 : index
    %c0_2 = arith.constant 0 : index
    %c0_3 = arith.constant 0 : index
    %4 = vector.load %arg4[%c0_1, %c0_2, %c0_3] : memref<1x24x512xf32, #tpu.memory_space<vmem>>, vector<1x24x512xf32>
    %c0_4 = arith.constant 0 : index
    %c0_5 = arith.constant 0 : index
    %c0_6 = arith.constant 0 : index
    %5 = vector.load %arg5[%c0_4, %c0_5, %c0_6] : memref<1x8x512xf32, #tpu.memory_space<vmem>>, vector<1x8x512xf32>
    %c0_7 = arith.constant 0 : index
    %c0_8 = arith.constant 0 : index
    %c0_9 = arith.constant 0 : index
    %6 = vector.load %arg6[%c0_7, %c0_8, %c0_9] : memref<1x8x512xf32, #tpu.memory_space<vmem>>, vector<1x8x512xf32>
    "tpu.trace_start"() <{level = 10 : i32, message = "bqd,bkd->bqk"}> : () -> ()
    %cst = arith.constant dense<0.000000e+00> : vector<1x24x8xf32>
    %7 = tpu.matmul %4, %5, %cst {dimension_numbers = #tpu.dot_dimension_numbers<[2], [2], [1], [1], [0, 0, 0, 1, 1, 1], [0], [0]>} : vector<1x24x512xf32>, vector<1x8x512xf32>, vector<1x24x8xf32> -> vector<1x24x8xf32>
    "tpu.trace_stop"() : () -> ()
    %8 = vector.broadcast %3 : f32 to vector<1x24x8xf32>
    %9 = arith.mulf %7, %8 : vector<1x24x8xf32>
    %c0_10 = arith.constant 0 : index
    %c0_11 = arith.constant 0 : index
    %c0_12 = arith.constant 0 : index
    %10 = vector.load %arg8[%c0_10, %c0_11, %c0_12] : memref<1x24x1xf32, #tpu.memory_space<vmem>>, vector<1x24x1xf32>
    %cst_13 = arith.constant dense<0xFF800000> : vector<1x24xf32>
    %11 = vector.multi_reduction <maximumf>, %9, %cst_13 [2] : vector<1x24x8xf32> to vector<1x24xf32>
    %12 = vector.shape_cast %11 : vector<1x24xf32> to vector<1x24x1xf32>
    %13 = arith.maximumf %10, %12 : vector<1x24x1xf32>
    %14 = arith.subf %10, %13 : vector<1x24x1xf32>
    %15 = math.exp %14 : vector<1x24x1xf32>
    %16 = vector.broadcast %13 : vector<1x24x1xf32> to vector<1x24x8xf32>
    %17 = arith.subf %9, %16 : vector<1x24x8xf32>
    %18 = math.exp %17 : vector<1x24x8xf32>
    %c0_14 = arith.constant 0 : index
    %c0_15 = arith.constant 0 : index
    %c0_16 = arith.constant 0 : index
    %19 = vector.load %arg9[%c0_14, %c0_15, %c0_16] : memref<1x24x1xf32, #tpu.memory_space<vmem>>, vector<1x24x1xf32>
    %20 = arith.mulf %15, %19 : vector<1x24x1xf32>
    %cst_17 = arith.constant dense<0.000000e+00> : vector<1x24xf32>
    %21 = vector.multi_reduction <add>, %18, %cst_17 [2] : vector<1x24x8xf32> to vector<1x24xf32>
    %22 = vector.shape_cast %21 : vector<1x24xf32> to vector<1x24x1xf32>
    %23 = arith.addf %20, %22 : vector<1x24x1xf32>
    %c0_18 = arith.constant 0 : index
    %c0_19 = arith.constant 0 : index
    %c0_20 = arith.constant 0 : index
    %24 = vector.load %arg9[%c0_18, %c0_19, %c0_20] : memref<1x24x1xf32, #tpu.memory_space<vmem>>, vector<1x24x1xf32>
    tpu.vector_store %arg9[%c0_18, %c0_19, %c0_20], %23 {strides = array<i32>} : memref<1x24x1xf32, #tpu.memory_space<vmem>>, vector<1x24x1xf32>,
    %c0_21 = arith.constant 0 : index
    %c0_22 = arith.constant 0 : index
    %c0_23 = arith.constant 0 : index
    %25 = vector.load %arg10[%c0_21, %c0_22, %c0_23] : memref<1x24x512xf32, #tpu.memory_space<vmem>>, vector<1x24x512xf32>
    %26 = vector.broadcast %15 : vector<1x24x1xf32> to vector<1x24x512xf32>
    %27 = arith.mulf %26, %25 : vector<1x24x512xf32>
    %28 = vector.extract_strided_slice %18 {offsets = [0, 0, 0], sizes = [1, 24, 1], strides = [1, 1, 1]} : vector<1x24x8xf32> to vector<1x24x1xf32>
    %29 = vector.extract_strided_slice %6 {offsets = [0, 0, 0], sizes = [1, 1, 512], strides = [1, 1, 1]} : vector<1x8x512xf32> to vector<1x1x512xf32>
    %30 = vector.broadcast %28 : vector<1x24x1xf32> to vector<1x24x512xf32>
    %31 = vector.broadcast %29 : vector<1x1x512xf32> to vector<1x24x512xf32>
    %32 = arith.mulf %30, %31 : vector<1x24x512xf32>
    %33 = vector.extract_strided_slice %18 {offsets = [0, 0, 1], sizes = [1, 24, 1], strides = [1, 1, 1]} : vector<1x24x8xf32> to vector<1x24x1xf32>
    %34 = vector.extract_strided_slice %6 {offsets = [0, 1, 0], sizes = [1, 1, 512], strides = [1, 1, 1]} : vector<1x8x512xf32> to vector<1x1x512xf32>
    %35 = vector.broadcast %33 : vector<1x24x1xf32> to vector<1x24x512xf32>
    %36 = vector.broadcast %34 : vector<1x1x512xf32> to vector<1x24x512xf32>
    %37 = arith.mulf %35, %36 : vector<1x24x512xf32>
    %38 = arith.addf %32, %37 : vector<1x24x512xf32>
    %39 = vector.extract_strided_slice %18 {offsets = [0, 0, 2], sizes = [1, 24, 1], strides = [1, 1, 1]} : vector<1x24x8xf32> to vector<1x24x1xf32>
    %40 = vector.extract_strided_slice %6 {offsets = [0, 2, 0], sizes = [1, 1, 512], strides = [1, 1, 1]} : vector<1x8x512xf32> to vector<1x1x512xf32>
    %41 = vector.broadcast %39 : vector<1x24x1xf32> to vector<1x24x512xf32>
    %42 = vector.broadcast %40 : vector<1x1x512xf32> to vector<1x24x512xf32>
    %43 = arith.mulf %41, %42 : vector<1x24x512xf32>
    %44 = arith.addf %38, %43 : vector<1x24x512xf32>
    %45 = vector.extract_strided_slice %18 {offsets = [0, 0, 3], sizes = [1, 24, 1], strides = [1, 1, 1]} : vector<1x24x8xf32> to vector<1x24x1xf32>
    %46 = vector.extract_strided_slice %6 {offsets = [0, 3, 0], sizes = [1, 1, 512], strides = [1, 1, 1]} : vector<1x8x512xf32> to vector<1x1x512xf32>
    %47 = vector.broadcast %45 : vector<1x24x1xf32> to vector<1x24x512xf32>
    %48 = vector.broadcast %46 : vector<1x1x512xf32> to vector<1x24x512xf32>
    %49 = arith.mulf %47, %48 : vector<1x24x512xf32>
    %50 = arith.addf %44, %49 : vector<1x24x512xf32>
    %51 = vector.extract_strided_slice %18 {offsets = [0, 0, 4], sizes = [1, 24, 1], strides = [1, 1, 1]} : vector<1x24x8xf32> to vector<1x24x1xf32>
    %52 = vector.extract_strided_slice %6 {offsets = [0, 4, 0], sizes = [1, 1, 512], strides = [1, 1, 1]} : vector<1x8x512xf32> to vector<1x1x512xf32>
    %53 = vector.broadcast %51 : vector<1x24x1xf32> to vector<1x24x512xf32>
    %54 = vector.broadcast %52 : vector<1x1x512xf32> to vector<1x24x512xf32>
    %55 = arith.mulf %53, %54 : vector<1x24x512xf32>
    %56 = arith.addf %50, %55 : vector<1x24x512xf32>
    %57 = vector.extract_strided_slice %18 {offsets = [0, 0, 5], sizes = [1, 24, 1], strides = [1, 1, 1]} : vector<1x24x8xf32> to vector<1x24x1xf32>
    %58 = vector.extract_strided_slice %6 {offsets = [0, 5, 0], sizes = [1, 1, 512], strides = [1, 1, 1]} : vector<1x8x512xf32> to vector<1x1x512xf32>
    %59 = vector.broadcast %57 : vector<1x24x1xf32> to vector<1x24x512xf32>
    %60 = vector.broadcast %58 : vector<1x1x512xf32> to vector<1x24x512xf32>
    %61 = arith.mulf %59, %60 : vector<1x24x512xf32>
    %62 = arith.addf %56, %61 : vector<1x24x512xf32>
    %63 = vector.extract_strided_slice %18 {offsets = [0, 0, 6], sizes = [1, 24, 1], strides = [1, 1, 1]} : vector<1x24x8xf32> to vector<1x24x1xf32>
    %64 = vector.extract_strided_slice %6 {offsets = [0, 6, 0], sizes = [1, 1, 512], strides = [1, 1, 1]} : vector<1x8x512xf32> to vector<1x1x512xf32>
    %65 = vector.broadcast %63 : vector<1x24x1xf32> to vector<1x24x512xf32>
    %66 = vector.broadcast %64 : vector<1x1x512xf32> to vector<1x24x512xf32>
    %67 = arith.mulf %65, %66 : vector<1x24x512xf32>
    %68 = arith.addf %62, %67 : vector<1x24x512xf32>
    %69 = vector.extract_strided_slice %18 {offsets = [0, 0, 7], sizes = [1, 24, 1], strides = [1, 1, 1]} : vector<1x24x8xf32> to vector<1x24x1xf32>
    %70 = vector.extract_strided_slice %6 {offsets = [0, 7, 0], sizes = [1, 1, 512], strides = [1, 1, 1]} : vector<1x8x512xf32> to vector<1x1x512xf32>
    %71 = vector.broadcast %69 : vector<1x24x1xf32> to vector<1x24x512xf32>
    %72 = vector.broadcast %70 : vector<1x1x512xf32> to vector<1x24x512xf32>
    %73 = arith.mulf %71, %72 : vector<1x24x512xf32>
    %74 = arith.addf %68, %73 : vector<1x24x512xf32>
    %75 = arith.addf %27, %74 : vector<1x24x512xf32>
    %c0_24 = arith.constant 0 : index
    %c0_25 = arith.constant 0 : index
    %c0_26 = arith.constant 0 : index
    %76 = vector.load %arg10[%c0_24, %c0_25, %c0_26] : memref<1x24x512xf32, #tpu.memory_space<vmem>>, vector<1x24x512xf32>
    tpu.vector_store %arg10[%c0_24, %c0_25, %c0_26], %75 {strides = array<i32>} : memref<1x24x512xf32, #tpu.memory_space<vmem>>, vector<1x24x512xf32>,
    %c0_27 = arith.constant 0 : index
    %c0_28 = arith.constant 0 : index
    %c0_29 = arith.constant 0 : index
    %77 = vector.load %arg8[%c0_27, %c0_28, %c0_29] : memref<1x24x1xf32, #tpu.memory_space<vmem>>, vector<1x24x1xf32>
    tpu.vector_store %arg8[%c0_27, %c0_28, %c0_29], %13 {strides = array<i32>} : memref<1x24x1xf32, #tpu.memory_space<vmem>>, vector<1x24x1xf32>,
    %c0_i32_30 = arith.constant 0 : i32
    %78 = arith.cmpi eq, %arg2, %c0_i32_30 : i32
    %79 = arith.extui %78 : i1 to i32
    %c0_i32_31 = arith.constant 0 : i32
    %80 = arith.cmpi ne, %79, %c0_i32_31 : i32
    scf.if %80 {
      %c0_32 = arith.constant 0 : index
      %c0_33 = arith.constant 0 : index
      %c0_34 = arith.constant 0 : index
      %81 = vector.load %arg9[%c0_32, %c0_33, %c0_34] : memref<1x24x1xf32, #tpu.memory_space<vmem>>, vector<1x24x1xf32>
      %82 = tpu.reciprocal %81 {approx = true} : vector<1x24x1xf32> -> vector<1x24x1xf32>
      %c0_35 = arith.constant 0 : index
      %c0_36 = arith.constant 0 : index
      %c0_37 = arith.constant 0 : index
      %83 = vector.load %arg10[%c0_35, %c0_36, %c0_37] : memref<1x24x512xf32, #tpu.memory_space<vmem>>, vector<1x24x512xf32>
      %84 = vector.broadcast %82 : vector<1x24x1xf32> to vector<1x24x512xf32>
      %85 = arith.mulf %83, %84 : vector<1x24x512xf32>
      %c0_38 = arith.constant 0 : index
      %c0_39 = arith.constant 0 : index
      %c0_40 = arith.constant 0 : index
      %86 = vector.load %arg7[%c0_38, %c0_39, %c0_40] : memref<1x24x512xf32, #tpu.memory_space<vmem>>, vector<1x24x512xf32>
      tpu.vector_store %arg7[%c0_38, %c0_39, %c0_40], %85 {strides = array<i32>} : memref<1x24x512xf32, #tpu.memory_space<vmem>>, vector<1x24x512xf32>,
    } else {
    }
    return
  }
  func.func @transform_0(%arg0: i32, %arg1: i32, %arg2: i32) -> i32 {
    %c0_i32 = arith.constant 0 : i32
    %c0_i32_0 = arith.constant 0 : i32
    return %c0_i32 : i32
  }
  func.func @transform_1(%arg0: i32, %arg1: i32, %arg2: i32) -> (i32, i32, i32) {
    %c0_i32 = arith.constant 0 : i32
    %c0_i32_0 = arith.constant 0 : i32
    return %arg0, %arg1, %c0_i32 : i32, i32, i32
  }
  func.func @transform_2(%arg0: i32, %arg1: i32, %arg2: i32) -> (i32, i32, i32) {
    %c0_i32 = arith.constant 0 : i32
    %c0_i32_0 = arith.constant 0 : i32
    return %arg0, %arg2, %c0_i32 : i32, i32, i32
  }
  func.func @transform_3(%arg0: i32, %arg1: i32, %arg2: i32) -> (i32, i32, i32) {
    %c0_i32 = arith.constant 0 : i32
    %c0_i32_0 = arith.constant 0 : i32
    return %arg0, %arg2, %c0_i32 : i32, i32, i32
  }
  func.func @transform_4(%arg0: i32, %arg1: i32, %arg2: i32) -> (i32, i32, i32) {
    %c0_i32 = arith.constant 0 : i32
    %c0_i32_0 = arith.constant 0 : i32
    return %arg0, %arg1, %c0_i32 : i32, i32, i32
  }
}

</mosaic_0001>

<bundles_post_ra>
// kernel: tpu_custom_call.1
= control target key start
LH: loop header
LB: loop body
LE: loop exit
PB: predicated region body
PF: predicated region fallthrough
CT: control target
= control target key end

     0   :  { %10 = vsyncpa [#allocation7], 0  ;;  %s1412_s0 = inlined_call_operand.<no memory space> [shape: f32[1], index: 0, kind: input, shape index: {}]   ;;  %s1413_s1 = inlined_call_operand.hbm [shape: f32[1,24,512], index: 1, kind: input, shape index: {}]   ;;  %s1414_s2 = inlined_call_operand.hbm [shape: f32[1,8,512], index: 2, kind: input, shape index: {}]   ;;  %s1415_s3 = inlined_call_operand.hbm [shape: f32[1,8,512], index: 3, kind: input, shape index: {}]   ;;  %s1416_s4 = inlined_call_operand.hbm [shape: f32[1,24,512], index: 4, kind: output, shape index: {}]  }
   0x1   :  { %11 = vsyncpa [#allocation10], 0 }
   0x2   :  { %12 = vsyncpa [#allocation8], 0  ;;  %s1024_s15 = smov [#allocation9]   ;;  %s1025_s17 = smov [#allocation6]  }
   0x3   :  { %s33_s16 = sshll.u32 %s1024_s15, 4  ;;  %s20_s18 = sshll.u32 %s1025_s17, 4  ;;  %s34_s16 = int_to_ptr.vmem [resolvable:$true] %s33_s16  ;;  %s21_s18 = int_to_ptr.vmem [resolvable:$true] %s20_s18 }
   0x4   :  { %s946_s19 = scalar_lea.vmem %s34_s16, 512  ;;  %p951_p1 = scmp.lt.s32.totalorder %s34_s16, %s34_s16 }
   0x5   :  { %p947_p0 = scmp.ne.s32.totalorder %s34_s16, %s946_s19  ;;  %p952_p2 = scmp.lt.s32.totalorder %s946_s19, %s946_s19 }
   0x7   :  { %p953_p3 = por %p952_p2, %p951_p1 }
   0x9   :  { %p954_p4 = pnand %p953_p3, %p947_p0 }
   0xb   :  { %957 = shalt.err (!%p954_p4)
}
   0xc   :  { %36 = dma.hbm_to_vmem [thread:$0]  %s1414_s2, 512, %s34_s16, [#allocation10]  }
   0xd   :  { %s966_s22 = scalar_lea.vmem %s21_s18, 1536  ;;  %p971_p6 = scmp.lt.s32.totalorder %s21_s18, %s21_s18 }
   0xe   :  { %p967_p5 = scmp.ne.s32.totalorder %s21_s18, %s966_s22  ;;  %p972_p7 = scmp.lt.s32.totalorder %s966_s22, %s966_s22 }
  0x10   :  { %p973_p8 = por %p972_p7, %p971_p6 }
  0x12   :  { %p974_p9 = pnand %p973_p8, %p967_p5 }
  0x14   :  { %977 = shalt.err (!%p974_p9)
}
  0x15   :  { %s1026_s23 = smov 512   ;;  %s1027_s24 = smov 32  }
  0x16   :  { %26 = dma.hbm_to_vmem [thread:$0]  %s1413_s1, 1536, %s21_s18, [#allocation7], %s1026_s23, %s1026_s23, %s1027_s24  }
  0x17   :  { %s1028_s27 = smov [#allocation11]  }
  0x18   :  { %s43_s28 = sshll.u32 %s1028_s27, 4  ;;  %s44_s28 = int_to_ptr.vmem [resolvable:$true] %s43_s28 }
  0x19   :  { %s986_s2 = scalar_lea.vmem %s44_s28, 512  ;;  %p991_p11 = scmp.lt.s32.totalorder %s44_s28, %s44_s28 }
  0x1a   :  { %p987_p10 = scmp.ne.s32.totalorder %s44_s28, %s986_s2  ;;  %p992_p12 = scmp.lt.s32.totalorder %s986_s2, %s986_s2 }
  0x1c   :  { %p993_p13 = por %p992_p12, %p991_p11 }
  0x1e   :  { %p994_p0 = pnand %p993_p13, %p987_p10 }
  0x20   :  { %997 = shalt.err (!%p994_p0)
}
  0x21   :  { %46 = dma.hbm_to_vmem [thread:$0]  %s1415_s3, 512, %s44_s28, [#allocation10]  }
  0x22   :  { %1018 = dma.done.wait [#allocation7], 1536  }
  0x23   :  { %1019 = vsyncadd [#allocation7], 4294965760 }
  0x24   :  { %1020 = dma.done.wait [#allocation10], 1024  }
  0x25   :  { %1021 = vsyncadd [#allocation10], 4294966272  ;;  %v93_v0 = vld [vmem:[#allocation9 + $0x8] sm:$0xff]  ;;  %v95_v1 = vld [vmem:[#allocation9 + $0x18] sm:$0xff]  ;;  %vm60_vm0 = vcmask 7168   ;;  %v1029_v16 = vmov -inf   ;;  %v260_v19 = vstv %s1412_s0 }
  0x26   :  { %v92_v2 = vld [vmem:[#allocation9] sm:$0xff]  ;;  %130 = vmatprep.subr.mxu0 %v93_v0  ;;  %210 = vmatprep.subr.mxu1 %v95_v1  ;;  %v94_v3 = vld [vmem:[#allocation9 + $0x10] sm:$0xff]  ;;  %v81_v4 = vld [vmem:[#allocation6 + $0x8] sm:$0xff]  ;;  %61 = vst.msk [vmem:[#allocation2] sm:$0xff] %vm60_vm0, %v1029_v16  ;;  %vm267_vm1 = vcmask 64512   ;;  %v1030_v39 = vmov 0  }
  0x27   :  { %v83_v5 = vld [vmem:[#allocation6 + $0x18] sm:$0xff]  ;;  %131 = vmatpush1.xpose.msra.mxu0 %v92_v2  ;;  %211 = vmatpush1.xpose.msra.mxu1 %v94_v3  ;;  %v80_v6 = vld [vmem:[#allocation6] sm:$0xff]  ;;  %v82_v7 = vld [vmem:[#allocation6 + $0x10] sm:$0xff]  ;;  %62 = vst.msk [vmem:[#allocation2 + $0x8] sm:$0xff] %vm60_vm0, %v1029_v16  ;;  %v1031_v40 = vmov 0.0   ;;  %v1032_v53 = vmov 1  }
  0x28   :  { %164 = vmatprep.mubr.f32.mxu0 %v81_v4  ;;  %244 = vmatprep.mubr.f32.mxu1 %v83_v5  ;;  %v85_v8 = vld [vmem:[#allocation6 + $0x28] sm:$0xff]  ;;  %v87_v9 = vld [vmem:[#allocation6 + $0x38] sm:$0xff]  ;;  %v84_v10 = vld [vmem:[#allocation6 + $0x20] sm:$0xff]  ;;  %63 = vst.msk [vmem:[#allocation2 + $0x10] sm:$0xff] %vm60_vm0, %v1029_v16  ;;  %s1039_s0 = smov [#allocation12]  }
  0x29   :  { %v86_v11 = vld [vmem:[#allocation6 + $0x30] sm:$0xff]  ;;  %v89_v12 = vld [vmem:[#allocation6 + $0x48] sm:$0xff]  ;;  %v91_v13 = vld [vmem:[#allocation6 + $0x58] sm:$0xff]  ;;  %902 = vset.pattern.permute.xlu1 %v1030_v39  ;;  %903 = vset.pattern.permute.xlu0 %v1030_v39  ;;  %64 = vst.msk [vmem:[#allocation3] sm:$0xff] %vm60_vm0, %v1031_v40  ;;  %s873_s5 = sshll.u32 %s1039_s0, 4  ;;  %s874_s5 = int_to_ptr.vmem [resolvable:$true] %s873_s5 }
  0x2a   :  { %165 = vmatmul.mubr.f32.vlgmr.msra.gmra.mxu0 %v80_v6  ;;  %245 = vmatmul.mubr.f32.vlgmr.msra.gmra.mxu1 %v82_v7  ;;  %v88_v14 = vld [vmem:[#allocation6 + $0x40] sm:$0xff]  ;;  %v90_v15 = vld [vmem:[#allocation6 + $0x50] sm:$0xff]  ;;  %65 = vst.msk [vmem:[#allocation3 + $0x8] sm:$0xff] %vm60_vm0, %v1031_v40  ;;  %66 = vst.msk [vmem:[#allocation3 + $0x10] sm:$0xff] %vm60_vm0, %v1031_v40  ;;  %s998_s6 = scalar_lea.vmem %s874_s5, 1536  ;;  %p1003_p2 = scmp.lt.s32.totalorder %s874_s5, %s874_s5 }
  0x2b   :  { %169 = vmatprep.mubr.f32.mxu0 %v85_v8  ;;  %249 = vmatprep.mubr.f32.mxu1 %v87_v9  ;;  %v1033_v8 = vmov 2   ;;  %v1034_v9 = vmov 3   ;;  %p999_p1 = scmp.ne.s32.totalorder %s874_s5, %s998_s6  ;;  %p1004_p3 = scmp.lt.s32.totalorder %s998_s6, %s998_s6 }
  0x2d   :  { %v264_v41 = vld [vmem:[#allocation2] sm:$0xff]  ;;  %p1005_p4 = por %p1004_p3, %p1003_p2 }
  0x2e   :  { %170 = vmatmul.mubr.f32.gmra.mxu0 %v84_v10  ;;  %250 = vmatmul.mubr.f32.gmra.mxu1 %v86_v11  ;;  %v265_v44 = vld [vmem:[#allocation2 + $0x8] sm:$0xff]  ;;  %v1035_v10 = vmov 4  }
  0x2f   :  { %174 = vmatprep.mubr.f32.mxu0 %v89_v12  ;;  %254 = vmatprep.mubr.f32.mxu1 %v91_v13  ;;  %v266_v48 = vld [vmem:[#allocation2 + $0x10] sm:$0xff]  ;;  %v1036_v12 = vmov 5   ;;  %v1037_v13 = vmov 6   ;;  %p1006_p5 = pnand %p1005_p4, %p999_p1 }
  0x32   :  { %175 = vmatmul.mubr.f32.gmra.mxu0 %v88_v14  ;;  %255 = vmatmul.mubr.f32.gmra.mxu1 %v90_v15  ;;  %v1038_v14 = vmov 7  }
  0xea   :  { %v166_v17 = vpop.f32.mrf.mxu0  ;;  %v246_v18 = vpop.f32.mrf.mxu1 }
  0xeb   :  { %v247_v20 = vadd.f32 %v246_v18, %v166_v17  ;;  %v313_v17 = vld [vmem:[#allocation3] sm:$0xff] }
  0xec   :  { %v168_v21 = vpop.f32.mrf.mxu0  ;;  %v248_v22 = vpop.f32.mrf.mxu1 }
  0xed   :  { %v261_v23 = vmul.f32 %v260_v19, %v247_v20  ;;  %v314_v20 = vld [vmem:[#allocation3 + $0x8] sm:$0xff] }
  0xee   :  { %v171_v24 = vpop.f32.mrf.mxu0  ;;  %v251_v25 = vpop.f32.mrf.mxu1 }
  0xef   :  { %v252_v26 = vadd.f32 %v251_v25, %v171_v24  ;;  %v268_v27 = vsel %vm267_vm1, %v261_v23, -inf }
  0xf0   :  { %v253_v28 = vpop.f32.mrf.mxu1  ;;  %269 = vmax.xlane.f32.xlu0 %v268_v27  ;;  %v173_v29 = vpop.f32.mrf.mxu0 }
  0xf1   :  { %v262_v30 = vmul.f32 %v260_v19, %v252_v26  ;;  %v389_v26 = vlaneseq }
  0xf2   :  { %v176_v31 = vpop.f32.mrf.mxu0  ;;  %v256_v32 = vpop.f32.mrf.mxu1 }
  0xf3   :  { %v257_v33 = vadd.f32 %v256_v32, %v176_v31  ;;  %v271_v34 = vsel %vm267_vm1, %v262_v30, -inf  ;;  %v390_v29 = vshrl.u32 %v389_v26, 7  ;;  %v1132_v32 = vld [vmem:[#allocation11] sm:$0xff] }
  0xf4   :  { %272 = vmax.xlane.f32.xlu0 %v271_v34  ;;  %v178_v35 = vpop.f32.mrf.mxu0  ;;  %v258_v36 = vpop.f32.mrf.mxu1  ;;  %v1134_v34 = vld [vmem:[#allocation11 + $0x8] sm:$0xff] }
  0xf5   :  { %v263_v37 = vmul.f32 %v260_v19, %v257_v33  ;;  %v391_v33 = vsub.s32 0, %v390_v29  ;;  %v1136_v35 = vld [vmem:[#allocation11 + $0x10] sm:$0xff]  ;;  %v1138_v36 = vld [vmem:[#allocation11 + $0x18] sm:$0xff] }
  0xf7   :  { %v274_v38 = vsel %vm267_vm1, %v263_v37, -inf  ;;  %v1149_v40 = vrot.slane %v1136_v35, %v391_v33 }
  0xf8   :  { %275 = vmax.xlane.f32.xlu1 %v274_v38  ;;  %v1143_v38 = vrot.slane %v1132_v32, %v391_v33 }
 0x179   :  { %v270_v42 = vpop.xlane.xlu0 %269 }
 0x17a   :  { %v277_v43 = vmax.f32 %v264_v41, %v270_v42 }
 0x17c   :  { %v280_v45 = vsub.f32 %v264_v41, %v277_v43  ;;  %805 = vst.msk [vmem:[#allocation2] sm:$0xff] %vm60_vm0, %v277_v43  ;;  %291 = vperm.xlu1 %902, %v277_v43   ;;  %v1152_v41 = vrot.slane %v1138_v36, %v391_v33 }
 0x17d   :  { %v273_v46 = vpop.xlane.xlu0 %272 }
 0x17e   :  { %v278_v47 = vmax.f32 %v265_v44, %v273_v46  ;;  %v283_v61 = vmul.f32 1.442695, %v280_v45 }
 0x180   :  { %v281_v49 = vsub.f32 %v265_v44, %v278_v47  ;;  %806 = vst.msk [vmem:[#allocation2 + $0x8] sm:$0xff] %vm60_vm0, %v278_v47  ;;  %296 = vperm.xlu0 %903, %v278_v47  }
 0x181   :  { %v276_v50 = vpop.xlane.xlu1 %275 }
 0x182   :  { %v279_v51 = vmax.f32 %v266_v48, %v276_v50  ;;  %v285_v1 = vmul.f32 1.442695, %v281_v49  ;;  %v315_v49 = vld [vmem:[#allocation3 + $0x10] sm:$0xff] }
 0x184   :  { %v282_v52 = vsub.f32 %v266_v48, %v279_v51  ;;  %807 = vst.msk [vmem:[#allocation2 + $0x10] sm:$0xff] %vm60_vm0, %v279_v51  ;;  %301 = vperm.xlu1 %902, %v279_v51   ;;  %905 = vset.pattern.permute.xlu0 %v1032_v53 }
 0x186   :  { %v287_v11 = vmul.f32 1.442695, %v282_v52 }
 0x1f7   :  { %v292_v54 = vpop.permute.xlu1 %291 }
 0x1f8   :  { %v304_v55 = vsub.f32 %v261_v23, %v292_v54 }
 0x1fa   :  { %v307_v56 = vmul.f32 1.442695, %v304_v55 }
 0x1fb   :  { %v297_v57 = vpop.permute.xlu0 %296 }
 0x1fc   :  { %920 = vpow2.f32 %v307_v56  ;;  %v305_v58 = vsub.f32 %v262_v30, %v297_v57 }
 0x1fe   :  { %v309_v59 = vmul.f32 1.442695, %v305_v58  ;;  %v431_v58 = vsub.s32 1, %v390_v29 }
 0x1ff   :  { %v302_v63 = vpop.permute.xlu1 %301 }
 0x200   :  { %922 = vpow2.f32 %v309_v59  ;;  %v306_v3 = vsub.f32 %v263_v37, %v302_v63  ;;  %v1175_v63 = vrot.slane %v1132_v32, %v431_v58 }
 0x201   :  { %924 = vpow2.f32 %v283_v61  ;;  %v535_v61 = vsub.s32 3, %v390_v29 }
 0x202   :  { %926 = vpow2.f32 %v285_v1  ;;  %v311_v4 = vmul.f32 1.442695, %v306_v3  ;;  %v1183_v3 = vrot.slane %v1136_v35, %v431_v58 }
 0x204   :  { %928 = vpow2.f32 %v311_v4  ;;  %v1186_v4 = vrot.slane %v1138_v36, %v431_v58 }
 0x205   :  { %930 = vpow2.f32 %v287_v11  ;;  %v1201_v11 = vrot.slane %v1132_v32, %v535_v61 }
 0x206   :  { %1425 = vst [vmem:[#allocation20_spill] sm:$0xff] %v1186_v4 }
 0x209   :  { %v1094_v60 = vpop.eup %920 }
 0x20a   :  { %v319_v62 = vsel %vm267_vm1, %v1094_v60, 0.0 }
 0x20b   :  { %320 = vadd.xlane.f32.xlu1 %v319_v62 }
 0x20d   :  { %v1098_v0 = vpop.eup %922 }
 0x20e   :  { %v322_v2 = vsel %vm267_vm1, %v1098_v0, 0.0  ;;  %v925_v5 = vpop.eup %924 }
 0x20f   :  { %323 = vadd.xlane.f32.xlu0 %v322_v2  ;;  %v927_v6 = vpop.eup %926  ;;  %v316_v18 = vmul.f32 %v925_v5, %v313_v17  ;;  %v1180_v2 = vrot.slane %v1134_v34, %v431_v58 }
 0x210   :  { %v317_v22 = vmul.f32 %v927_v6, %v314_v20 }
 0x211   :  { %v929_v7 = vpop.eup %928 }
 0x212   :  { %v1104_v15 = vpop.eup %930  ;;  %v325_v16 = vsel %vm267_vm1, %v929_v7, 0.0 }
 0x213   :  { %v318_v50 = vmul.f32 %v1104_v15, %v315_v49 }
 0x21c   :  { %349 = vperm.xlu1 %902, %v925_v5   ;;  %v639_v5 = vsub.s32 5, %v390_v29 }
 0x21e   :  { %v1225_v20 = vrot.slane %v1132_v32, %v639_v5 }
 0x220   :  { %354 = vperm.xlu1 %902, %v927_v6  }
 0x224   :  { %376 = vperm.xlu1 %902, %v1094_v60  }
 0x225   :  { %426 = vperm.xlu0 %905, %v929_v7  }
 0x228   :  { %381 = vperm.xlu1 %902, %v1098_v0  }
 0x229   :  { %907 = vset.pattern.permute.xlu0 %v1033_v8 }
 0x22a   :  { %478 = vperm.xlu0 %907, %v929_v7  }
 0x22c   :  { %386 = vperm.xlu1 %902, %v929_v7  }
 0x22e   :  { %909 = vset.pattern.permute.xlu0 %v1034_v9 }
 0x22f   :  { %530 = vperm.xlu0 %909, %v929_v7  }
 0x230   :  { %904 = vset.pattern.permute.xlu1 %v1032_v53 }
 0x233   :  { %911 = vset.pattern.permute.xlu0 %v1035_v10 }
 0x234   :  { %582 = vperm.xlu0 %911, %v929_v7  }
 0x238   :  { %913 = vset.pattern.permute.xlu0 %v1036_v12 }
 0x239   :  { %634 = vperm.xlu0 %913, %v929_v7  }
 0x23d   :  { %915 = vset.pattern.permute.xlu0 %v1037_v13 }
 0x23e   :  { %686 = vperm.xlu0 %915, %v929_v7  }
 0x242   :  { %917 = vset.pattern.permute.xlu0 %v1038_v14 }
 0x243   :  { %738 = vperm.xlu0 %917, %v929_v7  }
 0x247   :  { %918 = vset.pattern.permute.xlu0 %v1030_v39 }
 0x248   :  { %359 = vperm.xlu0 %918, %v1104_v15   ;;  %v1210_v15 = vrot.slane %v1138_v36, %v535_v61 }
 0x250   :  { %326 = vadd.xlane.f32.xlu1 %v325_v16 }
 0x261   :  { %418 = vperm.xlu1 %904, %v1094_v60  }
 0x265   :  { %422 = vperm.xlu1 %904, %v1098_v0  }
 0x269   :  { %906 = vset.pattern.permute.xlu1 %v1033_v8 }
 0x26a   :  { %470 = vperm.xlu1 %906, %v1094_v60  }
 0x26e   :  { %474 = vperm.xlu1 %906, %v1098_v0  }
 0x272   :  { %908 = vset.pattern.permute.xlu1 %v1034_v9  ;;  %v691_v9 = vsub.s32 6, %v390_v29 }
 0x273   :  { %522 = vperm.xlu1 %908, %v1094_v60  }
 0x274   :  { %v1239_v26 = vrot.slane %v1132_v32, %v691_v9 }
 0x277   :  { %526 = vperm.xlu1 %908, %v1098_v0  }
 0x27b   :  { %910 = vset.pattern.permute.xlu1 %v1035_v10 }
 0x27c   :  { %574 = vperm.xlu1 %910, %v1094_v60  }
 0x280   :  { %578 = vperm.xlu1 %910, %v1098_v0  }
 0x284   :  { %912 = vset.pattern.permute.xlu1 %v1036_v12  ;;  %v1204_v12 = vrot.slane %v1134_v34, %v535_v61 }
 0x285   :  { %626 = vperm.xlu1 %912, %v1094_v60  }
 0x289   :  { %630 = vperm.xlu1 %912, %v1098_v0  }
 0x28d   :  { %914 = vset.pattern.permute.xlu1 %v1037_v13  ;;  %v743_v13 = vsub.s32 7, %v390_v29 }
 0x28e   :  { %678 = vperm.xlu1 %914, %v1094_v60  }
 0x28f   :  { %v1263_v49 = vrot.slane %v1136_v35, %v743_v13 }
 0x292   :  { %682 = vperm.xlu1 %914, %v1098_v0  }
 0x294   :  { %v321_v19 = vpop.xlane.xlu1 %320 }
 0x295   :  { %v328_v21 = vadd.f32 %v321_v19, %v316_v18 }
 0x296   :  { %916 = vset.pattern.permute.xlu1 %v1038_v14  ;;  %v1207_v14 = vrot.slane %v1136_v35, %v535_v61 }
 0x297   :  { %332 = vst.msk [vmem:[#allocation3] sm:$0xff] %vm60_vm0, %v328_v21  ;;  %730 = vperm.xlu1 %916, %v1094_v60   ;;  %v483_v60 = vsub.s32 2, %v390_v29  ;;  %v1228_v21 = vrot.slane %v1134_v34, %v639_v5 }
 0x298   :  { %v324_v23 = vpop.xlane.xlu0 %323  ;;  %v1123_v24 = vpop.permute.xlu1 %349 }
 0x299   :  { %v329_v25 = vadd.f32 %v324_v23, %v317_v22  ;;  %v1189_v6 = vrot.slane %v1132_v32, %v483_v60  ;;  %v1192_v7 = vrot.slane %v1134_v34, %v483_v60  ;;  %v1195_v8 = vrot.slane %v1136_v35, %v483_v60 }
 0x29a   :  { %v1198_v10 = vrot.slane %v1138_v36, %v483_v60  ;;  %v1233_v23 = vrot.slane %v1136_v35, %v639_v5 }
 0x29b   :  { %333 = vst.msk [vmem:[#allocation3 + $0x8] sm:$0xff] %vm60_vm0, %v329_v25  ;;  %734 = vperm.xlu1 %916, %v1098_v0   ;;  %v587_v0 = vsub.s32 4, %v390_v29  ;;  %v1236_v25 = vrot.slane %v1138_v36, %v639_v5  ;;  %v1245_v29 = vrot.slane %v1136_v35, %v691_v9 }
 0x29c   :  { %v1127_v27 = vpop.permute.xlu1 %354  ;;  %1426 = vst [vmem:[#allocation21_spill] sm:$0xff] %v1198_v10 }
 0x29d   :  { %v1213_v16 = vrot.slane %v1132_v32, %v587_v0  ;;  %v1216_v17 = vrot.slane %v1134_v34, %v587_v0  ;;  %v1219_v18 = vrot.slane %v1136_v35, %v587_v0  ;;  %v1222_v19 = vrot.slane %v1138_v36, %v587_v0 }
 0x29e   :  { %v811_v28 = vld [vmem:[#allocation3] sm:$0xff] }
 0x29f   :  { %919 = vset.pattern.permute.xlu1 %v1030_v39  ;;  %932 = vrcp.f32 %v811_v28  ;;  %v1146_v39 = vrot.slane %v1134_v34, %v391_v33  ;;  %1427 = vst [vmem:[#allocation22_spill] sm:$0xff] %v1219_v18  ;;  %1428 = vst [vmem:[#allocation23_spill] sm:$0xff] %v1222_v19  ;;  %v1242_v28 = vrot.slane %v1134_v34, %v691_v9 }
 0x2a0   :  { %v1130_v30 = vpop.permute.xlu1 %376  ;;  %v1251_v33 = vrot.slane %v1132_v32, %v743_v13 }
 0x2a1   :  { %v407_v35 = vmul.f32 %v1149_v40, %v1130_v30 }
 0x2a2   :  { %v812_v31 = vld [vmem:[#allocation3 + $0x8] sm:$0xff] }
 0x2a3   :  { %934 = vrcp.f32 %v812_v31  ;;  %v1248_v31 = vrot.slane %v1138_v36, %v691_v9 }
 0x2a4   :  { %v1140_v37 = vpop.permute.xlu1 %381 }
 0x2a5   :  { %v410_v0 = vmul.f32 %v1146_v39, %v1140_v37  ;;  %v411_v5 = vmul.f32 %v1149_v40, %v1140_v37 }
 0x2a8   :  { %v387_v42 = vpop.permute.xlu1 %386 }
 0x2a9   :  { %v1155_v43 = vmul.f32 %v1143_v38, %v387_v42  ;;  %v1158_v44 = vmul.f32 %v1146_v39, %v387_v42  ;;  %v1161_v45 = vmul.f32 %v1149_v40, %v387_v42  ;;  %v1164_v46 = vmul.f32 %v1152_v41, %v387_v42 }
 0x2aa   :  { %v1254_v42 = vrot.slane %v1134_v34, %v743_v13 }
 0x2ab   :  { %1421 = vst [vmem:[#allocation16_spill] sm:$0xff] %v1155_v43  ;;  %1422 = vst [vmem:[#allocation17_spill] sm:$0xff] %v1158_v44 }
 0x2ac   :  { %1423 = vst [vmem:[#allocation18_spill] sm:$0xff] %v1161_v45  ;;  %1424 = vst [vmem:[#allocation19_spill] sm:$0xff] %v1164_v46  ;;  %v933_v47 = vpop.eup %932 }
 0x2ad   :  { %831 = vperm.xlu1 %919, %v933_v47   ;;  %v1257_v47 = vmul.f32 0.0, %v1123_v24  ;;  %v405_v24 = vmul.f32 %v1143_v38, %v1130_v30 }
 0x2b0   :  { %v935_v48 = vpop.eup %934 }
 0x2b1   :  { %836 = vperm.xlu1 %919, %v935_v48   ;;  %v1260_v48 = vmul.f32 0.0, %v1127_v27  ;;  %v406_v27 = vmul.f32 %v1146_v39, %v1130_v30 }
 0x2d9   :  { %v327_v51 = vpop.xlane.xlu1 %326 }
 0x2da   :  { %v330_v52 = vadd.f32 %v327_v51, %v318_v50  ;;  %v1266_v50 = vrot.slane %v1138_v36, %v743_v13  ;;  %v408_v36 = vmul.f32 %v1152_v41, %v1130_v30  ;;  %v412_v30 = vmul.f32 %v1152_v41, %v1140_v37 }
 0x2dc   :  { %334 = vst.msk [vmem:[#allocation3 + $0x10] sm:$0xff] %vm60_vm0, %v330_v52 }
 0x2dd   :  { %v419_v53 = vpop.permute.xlu1 %418 }
 0x2de   :  { %v445_v51 = vmul.f32 %v1175_v63, %v419_v53  ;;  %v446_v32 = vmul.f32 %v1180_v2, %v419_v53  ;;  %v447_v52 = vmul.f32 %v1183_v3, %v419_v53  ;;  %v448_v34 = vmul.f32 %v1186_v4, %v419_v53 }
 0x2e0   :  { %v457_v9 = vadd.f32 %v445_v51, %v405_v24  ;;  %v458_v13 = vadd.f32 %v446_v32, %v406_v27  ;;  %v459_v46 = vadd.f32 %v447_v52, %v407_v35  ;;  %v460_v45 = vadd.f32 %v448_v34, %v408_v36 }
 0x2e1   :  { %v423_v54 = vpop.permute.xlu1 %422 }
 0x2e2   :  { %v449_v58 = vmul.f32 %v1175_v63, %v423_v54  ;;  %v450_v60 = vmul.f32 %v1180_v2, %v423_v54  ;;  %v451_v53 = vmul.f32 %v1183_v3, %v423_v54  ;;  %v452_v61 = vmul.f32 %v1186_v4, %v423_v54 }
 0x2e3   :  { %v813_v55 = vld [vmem:[#allocation3 + $0x10] sm:$0xff] }
 0x2e4   :  { %936 = vrcp.f32 %v813_v55  ;;  %v462_v4 = vadd.f32 %v450_v60, %v410_v0  ;;  %v464_v41 = vadd.f32 %v452_v61, %v412_v30 }
 0x2e5   :  { %v1168_v56 = vpop.permute.xlu1 %470 }
 0x2e6   :  { %v497_v44 = vmul.f32 %v1189_v6, %v1168_v56  ;;  %v498_v54 = vmul.f32 %v1192_v7, %v1168_v56  ;;  %v500_v39 = vmul.f32 %v1198_v10, %v1168_v56 }
 0x2e8   :  { %v509_v36 = vadd.f32 %v497_v44, %v457_v9 }
 0x2e9   :  { %v1170_v57 = vpop.permute.xlu1 %474 }
 0x2ea   :  { %v501_v51 = vmul.f32 %v1189_v6, %v1170_v57  ;;  %v502_v32 = vmul.f32 %v1192_v7, %v1170_v57  ;;  %v503_v52 = vmul.f32 %v1195_v8, %v1170_v57  ;;  %v504_v34 = vmul.f32 %v1198_v10, %v1170_v57 }
 0x2ec   :  { %v514_v10 = vadd.f32 %v502_v32, %v462_v4  ;;  %v516_v44 = vadd.f32 %v504_v34, %v464_v41 }
 0x2ee   :  { %v1172_v59 = vpop.permute.xlu1 %522 }
 0x2ef   :  { %v550_v24 = vmul.f32 %v1204_v12, %v1172_v59  ;;  %v551_v27 = vmul.f32 %v1207_v14, %v1172_v59  ;;  %v552_v35 = vmul.f32 %v1210_v15, %v1172_v59 }
 0x2f1   :  { %v937_v62 = vpop.eup %936 }
 0x2f2   :  { %v1177_v1 = vpop.permute.xlu1 %526  ;;  %841 = vperm.xlu0 %918, %v937_v62   ;;  %v409_v62 = vmul.f32 %v1143_v38, %v1140_v37  ;;  %v499_v38 = vmul.f32 %v1195_v8, %v1168_v56  ;;  %v463_v37 = vadd.f32 %v451_v53, %v411_v5  ;;  %v549_v56 = vmul.f32 %v1201_v11, %v1172_v59 }
 0x2f3   :  { %v512_v53 = vadd.f32 %v500_v39, %v460_v45  ;;  %v553_v57 = vmul.f32 %v1201_v11, %v1177_v1  ;;  %v555_v0 = vmul.f32 %v1207_v14, %v1177_v1  ;;  %v556_v5 = vmul.f32 %v1210_v15, %v1177_v1 }
 0x2f4   :  { %v461_v43 = vadd.f32 %v449_v58, %v409_v62  ;;  %v510_v58 = vadd.f32 %v498_v54, %v458_v13  ;;  %v511_v60 = vadd.f32 %v499_v38, %v459_v46  ;;  %v554_v62 = vmul.f32 %v1204_v12, %v1177_v1 }
 0x2f5   :  { %v515_v59 = vadd.f32 %v503_v52, %v463_v37  ;;  %v561_v9 = vadd.f32 %v549_v56, %v509_v36  ;;  %v564_v13 = vadd.f32 %v552_v35, %v512_v53  ;;  %v568_v41 = vadd.f32 %v556_v5, %v516_v44 }
 0x2f6   :  { %v513_v30 = vadd.f32 %v501_v51, %v461_v43  ;;  %v562_v46 = vadd.f32 %v550_v24, %v510_v58  ;;  %v563_v45 = vadd.f32 %v551_v27, %v511_v60  ;;  %v566_v4 = vadd.f32 %v554_v62, %v514_v10 }
 0x2f7   :  { %v1230_v22 = vpop.permute.xlu1 %574  ;;  %v567_v37 = vadd.f32 %v555_v0, %v515_v59 }
 0x2f8   :  { %v601_v54 = vmul.f32 %v1213_v16, %v1230_v22  ;;  %v602_v38 = vmul.f32 %v1216_v17, %v1230_v22  ;;  %v603_v39 = vmul.f32 %v1219_v18, %v1230_v22  ;;  %v604_v1 = vmul.f32 %v1222_v19, %v1230_v22 }
 0x2f9   :  { %v565_v43 = vadd.f32 %v553_v57, %v513_v30 }
 0x2fa   :  { %v613_v35 = vadd.f32 %v601_v54, %v561_v9  ;;  %v614_v36 = vadd.f32 %v602_v38, %v562_v46  ;;  %v615_v58 = vadd.f32 %v603_v39, %v563_v45  ;;  %v616_v60 = vadd.f32 %v604_v1, %v564_v13 }
 0x2fb   :  { %v1272_v55 = vpop.permute.xlu1 %578 }
 0x2fc   :  { %v605_v32 = vmul.f32 %v1213_v16, %v1272_v55  ;;  %v606_v52 = vmul.f32 %v1216_v17, %v1272_v55  ;;  %v607_v34 = vmul.f32 %v1219_v18, %v1272_v55  ;;  %v608_v56 = vmul.f32 %v1222_v19, %v1272_v55 }
 0x2fe   :  { %v617_v5 = vadd.f32 %v605_v32, %v565_v43  ;;  %v618_v30 = vadd.f32 %v606_v52, %v566_v4  ;;  %v619_v59 = vadd.f32 %v607_v34, %v567_v37  ;;  %v620_v44 = vadd.f32 %v608_v56, %v568_v41 }
 0x300   :  { %v627_v40 = vpop.permute.xlu1 %626 }
 0x301   :  { %v653_v24 = vmul.f32 %v1225_v20, %v627_v40  ;;  %v654_v22 = vmul.f32 %v1228_v21, %v627_v40  ;;  %v655_v10 = vmul.f32 %v1233_v23, %v627_v40  ;;  %v656_v27 = vmul.f32 %v1236_v25, %v627_v40 }
 0x303   :  { %v665_v19 = vadd.f32 %v653_v24, %v613_v35  ;;  %v666_v18 = vadd.f32 %v654_v22, %v614_v36  ;;  %v667_v40 = vadd.f32 %v655_v10, %v615_v58  ;;  %v668_v9 = vadd.f32 %v656_v27, %v616_v60 }
 0x304   :  { %v631_v61 = vpop.permute.xlu1 %630 }
 0x305   :  { %v657_v46 = vmul.f32 %v1225_v20, %v631_v61  ;;  %v658_v45 = vmul.f32 %v1228_v21, %v631_v61  ;;  %v659_v13 = vmul.f32 %v1233_v23, %v631_v61  ;;  %v660_v54 = vmul.f32 %v1236_v25, %v631_v61 }
 0x307   :  { %v670_v61 = vadd.f32 %v658_v45, %v618_v30  ;;  %v671_v24 = vadd.f32 %v659_v13, %v619_v59  ;;  %v672_v22 = vadd.f32 %v660_v54, %v620_v44 }
 0x309   :  { %v679_v51 = vpop.permute.xlu1 %678 }
 0x30a   :  { %v705_v53 = vmul.f32 %v1239_v26, %v679_v51  ;;  %v706_v57 = vmul.f32 %v1242_v28, %v679_v51  ;;  %v707_v62 = vmul.f32 %v1245_v29, %v679_v51  ;;  %v708_v55 = vmul.f32 %v1248_v31, %v679_v51 }
 0x30c   :  { %v717_v38 = vadd.f32 %v705_v53, %v665_v19  ;;  %v718_v39 = vadd.f32 %v706_v57, %v666_v18  ;;  %v719_v1 = vadd.f32 %v707_v62, %v667_v40  ;;  %v720_v51 = vadd.f32 %v708_v55, %v668_v9 }
 0x30d   :  { %v683_v0 = vpop.permute.xlu1 %682  ;;  %v669_v18 = vadd.f32 %v657_v46, %v617_v5 }
 0x30e   :  { %v709_v43 = vmul.f32 %v1239_v26, %v683_v0  ;;  %v710_v4 = vmul.f32 %v1242_v28, %v683_v0  ;;  %v711_v37 = vmul.f32 %v1245_v29, %v683_v0  ;;  %v712_v41 = vmul.f32 %v1248_v31, %v683_v0 }
 0x310   :  { %v721_v58 = vadd.f32 %v709_v43, %v669_v18  ;;  %v722_v60 = vadd.f32 %v710_v4, %v670_v61  ;;  %v723_v53 = vadd.f32 %v711_v37, %v671_v24  ;;  %v724_v57 = vadd.f32 %v712_v41, %v672_v22  ;;  %v427_v18 = vpop.permute.xlu0 %426 }
 0x312   :  { %v731_v32 = vpop.permute.xlu1 %730 }
 0x313   :  { %v757_v52 = vmul.f32 %v1251_v33, %v731_v32  ;;  %v758_v34 = vmul.f32 %v1254_v42, %v731_v32  ;;  %v759_v56 = vmul.f32 %v1263_v49, %v731_v32  ;;  %v760_v19 = vmul.f32 %v1266_v50, %v731_v32 }
 0x315   :  { %v769_v10 = vadd.f32 %v757_v52, %v717_v38  ;;  %v770_v27 = vadd.f32 %v758_v34, %v718_v39  ;;  %v771_v35 = vadd.f32 %v759_v56, %v719_v1  ;;  %v772_v36 = vadd.f32 %v760_v19, %v720_v51 }
 0x316   :  { %v735_v62 = vpop.permute.xlu1 %734 }
 0x317   :  { %v761_v55 = vmul.f32 %v1251_v33, %v735_v62  ;;  %v762_v0 = vmul.f32 %v1254_v42, %v735_v62  ;;  %v763_v40 = vmul.f32 %v1263_v49, %v735_v62  ;;  %v764_v5 = vmul.f32 %v1266_v50, %v735_v62 }
 0x318   :  { %v781_v30 = vadd.f32 %v769_v10, %v1257_v47  ;;  %v782_v59 = vadd.f32 %v770_v27, %v1257_v47  ;;  %v783_v44 = vadd.f32 %v771_v35, %v1257_v47  ;;  %v784_v9 = vadd.f32 %v772_v36, %v1257_v47  ;;  %v1429_v36 = vld [vmem:[#allocation20_spill] sm:$0xff] }
 0x319   :  { %v773_v46 = vadd.f32 %v761_v55, %v721_v58  ;;  %v774_v45 = vadd.f32 %v762_v0, %v722_v60  ;;  %v775_v13 = vadd.f32 %v763_v40, %v723_v53  ;;  %v776_v54 = vadd.f32 %v764_v5, %v724_v57  ;;  %v1430_v60 = vld [vmem:[#allocation16_spill] sm:$0xff]  ;;  %v1431_v57 = vld [vmem:[#allocation17_spill] sm:$0xff]  ;;  %v1432_v55 = vld [vmem:[#allocation18_spill] sm:$0xff] }
 0x31a   :  { %v453_v10 = vmul.f32 %v1175_v63, %v427_v18  ;;  %v454_v27 = vmul.f32 %v1180_v2, %v427_v18  ;;  %v455_v35 = vmul.f32 %v1183_v3, %v427_v18  ;;  %v456_v58 = vmul.f32 %v1429_v36, %v427_v18  ;;  %v1433_v40 = vld [vmem:[#allocation19_spill] sm:$0xff] }
 0x31b   :  { %v785_v38 = vadd.f32 %v773_v46, %v1260_v48  ;;  %v786_v39 = vadd.f32 %v774_v45, %v1260_v48  ;;  %v787_v1 = vadd.f32 %v775_v13, %v1260_v48  ;;  %v788_v51 = vadd.f32 %v776_v54, %v1260_v48  ;;  %v479_v48 = vpop.permute.xlu0 %478 }
 0x31c   :  { %v465_v53 = vadd.f32 %v453_v10, %v1430_v60  ;;  %v466_v62 = vadd.f32 %v454_v27, %v1431_v57  ;;  %v467_v0 = vadd.f32 %v455_v35, %v1432_v55  ;;  %v468_v5 = vadd.f32 %v456_v58, %v1433_v40 }
 0x31d   :  { %v507_v63 = vmul.f32 %v1195_v8, %v479_v48 }
 0x31f   :  { %v531_v61 = vpop.permute.xlu0 %530  ;;  %v519_v45 = vadd.f32 %v507_v63, %v467_v0 }
 0x320   :  { %v557_v54 = vmul.f32 %v1201_v11, %v531_v61 }
 0x323   :  { %v583_v24 = vpop.permute.xlu0 %582 }
 0x324   :  { %v609_v8 = vmul.f32 %v1213_v16, %v583_v24 }
 0x327   :  { %v635_v22 = vpop.permute.xlu0 %634 }
 0x328   :  { %v832_v43 = vpop.permute.xlu1 %831  ;;  %v661_v11 = vmul.f32 %v1225_v20, %v635_v22 }
 0x329   :  { %v844_v4 = vmul.f32 %v832_v43, %v781_v30  ;;  %v845_v37 = vmul.f32 %v832_v43, %v782_v59  ;;  %v846_v41 = vmul.f32 %v832_v43, %v783_v44  ;;  %v847_v32 = vmul.f32 %v832_v43, %v784_v9  ;;  %v1434_v44 = vld [vmem:[#allocation21_spill] sm:$0xff] }
 0x32a   :  { %v505_v30 = vmul.f32 %v1189_v6, %v479_v48  ;;  %v506_v59 = vmul.f32 %v1192_v7, %v479_v48  ;;  %v508_v2 = vmul.f32 %v1434_v44, %v479_v48 }
 0x32b   :  { %856 = vst [vmem:[#allocation12] sm:$0xff] %v844_v4  ;;  %857 = vst [vmem:[#allocation12 + $0x8] sm:$0xff] %v845_v37  ;;  %v687_v9 = vpop.permute.xlu0 %686  ;;  %v610_v4 = vmul.f32 %v1216_v17, %v583_v24  ;;  %v1435_v37 = vld [vmem:[#allocation22_spill] sm:$0xff] }
 0x32c   :  { %858 = vst [vmem:[#allocation12 + $0x10] sm:$0xff] %v846_v41  ;;  %859 = vst [vmem:[#allocation12 + $0x18] sm:$0xff] %v847_v32  ;;  %v837_v47 = vpop.permute.xlu1 %836  ;;  %v517_v3 = vadd.f32 %v505_v30, %v465_v53  ;;  %v518_v46 = vadd.f32 %v506_v59, %v466_v62  ;;  %v520_v13 = vadd.f32 %v508_v2, %v468_v5  ;;  %v1436_v32 = vld [vmem:[#allocation23_spill] sm:$0xff] }
 0x32d   :  { %v848_v52 = vmul.f32 %v837_v47, %v785_v38  ;;  %v849_v34 = vmul.f32 %v837_v47, %v786_v39  ;;  %v850_v56 = vmul.f32 %v837_v47, %v787_v1  ;;  %v851_v19 = vmul.f32 %v837_v47, %v788_v51 }
 0x32e   :  { %v558_v38 = vmul.f32 %v1204_v12, %v531_v61  ;;  %v559_v39 = vmul.f32 %v1207_v14, %v531_v61  ;;  %v560_v1 = vmul.f32 %v1210_v15, %v531_v61  ;;  %v569_v6 = vadd.f32 %v557_v54, %v517_v3 }
 0x32f   :  { %860 = vst [vmem:[#allocation12 + $0x20] sm:$0xff] %v848_v52  ;;  %861 = vst [vmem:[#allocation12 + $0x28] sm:$0xff] %v849_v34  ;;  %v611_v41 = vmul.f32 %v1435_v37, %v583_v24  ;;  %v612_v47 = vmul.f32 %v1436_v32, %v583_v24  ;;  %v739_v52 = vpop.permute.xlu0 %738  ;;  %v662_v12 = vmul.f32 %v1228_v21, %v635_v22 }
 0x330   :  { %862 = vst [vmem:[#allocation12 + $0x30] sm:$0xff] %v850_v56  ;;  %863 = vst [vmem:[#allocation12 + $0x38] sm:$0xff] %v851_v19  ;;  %v570_v51 = vadd.f32 %v558_v38, %v518_v46  ;;  %v571_v7 = vadd.f32 %v559_v39, %v519_v45  ;;  %v572_v43 = vadd.f32 %v560_v1, %v520_v13 }
 0x331   :  { %v663_v14 = vmul.f32 %v1233_v23, %v635_v22  ;;  %v664_v15 = vmul.f32 %v1236_v25, %v635_v22  ;;  %v621_v34 = vadd.f32 %v609_v8, %v569_v6  ;;  %v713_v18 = vmul.f32 %v1239_v26, %v687_v9 }
 0x332   :  { %v622_v56 = vadd.f32 %v610_v4, %v570_v51  ;;  %v623_v19 = vadd.f32 %v611_v41, %v571_v7  ;;  %v624_v16 = vadd.f32 %v612_v47, %v572_v43  ;;  %v714_v17 = vmul.f32 %v1242_v28, %v687_v9 }
 0x333   :  { %v715_v48 = vmul.f32 %v1245_v29, %v687_v9  ;;  %v716_v61 = vmul.f32 %v1248_v31, %v687_v9  ;;  %v673_v24 = vadd.f32 %v661_v11, %v621_v34  ;;  %v360_v27 = vpop.permute.xlu0 %359  ;;  %v765_v23 = vmul.f32 %v1251_v33, %v739_v52 }
 0x334   :  { %v674_v20 = vadd.f32 %v662_v12, %v622_v56  ;;  %v675_v10 = vadd.f32 %v663_v14, %v623_v19  ;;  %v676_v21 = vadd.f32 %v664_v15, %v624_v16  ;;  %v766_v25 = vmul.f32 %v1254_v42, %v739_v52 }
 0x335   :  { %v767_v22 = vmul.f32 %v1263_v49, %v739_v52  ;;  %v768_v35 = vmul.f32 %v1266_v50, %v739_v52  ;;  %v725_v26 = vadd.f32 %v713_v18, %v673_v24  ;;  %v370_v29 = vmul.f32 0.0, %v360_v27 }
 0x336   :  { %v726_v36 = vadd.f32 %v714_v17, %v674_v20  ;;  %v727_v28 = vadd.f32 %v715_v48, %v675_v10  ;;  %v728_v58 = vadd.f32 %v716_v61, %v676_v21 }
 0x337   :  { %v777_v60 = vadd.f32 %v765_v23, %v725_v26 }
 0x338   :  { %v778_v31 = vadd.f32 %v766_v25, %v726_v36  ;;  %v779_v53 = vadd.f32 %v767_v22, %v727_v28  ;;  %v780_v57 = vadd.f32 %v768_v35, %v728_v58 }
 0x339   :  { %v789_v62 = vadd.f32 %v777_v60, %v370_v29 }
 0x33a   :  { %v790_v55 = vadd.f32 %v778_v31, %v370_v29  ;;  %v791_v33 = vadd.f32 %v779_v53, %v370_v29  ;;  %v792_v0 = vadd.f32 %v780_v57, %v370_v29 }
 0x36d   :  { %v842_v42 = vpop.permute.xlu0 %841 }
 0x36e   :  { %v852_v40 = vmul.f32 %v842_v42, %v789_v62  ;;  %v853_v49 = vmul.f32 %v842_v42, %v790_v55  ;;  %v854_v5 = vmul.f32 %v842_v42, %v791_v33  ;;  %v855_v50 = vmul.f32 %v842_v42, %v792_v0 }
 0x370   :  { %864 = vst [vmem:[#allocation12 + $0x40] sm:$0xff] %v852_v40  ;;  %865 = vst [vmem:[#allocation12 + $0x48] sm:$0xff] %v853_v49 }
 0x371   :  { %866 = vst [vmem:[#allocation12 + $0x50] sm:$0xff] %v854_v5  ;;  %867 = vst [vmem:[#allocation12 + $0x58] sm:$0xff] %v855_v50 }
 0x372   :  { %1009 = shalt.err (!%p1006_p5)
}
 0x373   :  { %879 = dma.vmem_to_hbm [thread:$0]  %s874_s5, 1536, %s1416_s4, [#allocation8], %s1026_s23, %s1026_s23, %s1027_s24  }
 0x374   :  { %1022 = dma.done.wait [#allocation8], 1536  }
 0x375   :  { %1023 = vsyncadd [#allocation8], 4294965760 }
 0x376   :  { %883 = vsyncpa [#allocation7], 1 }
 0x377   :  { %884 = vsyncpa [#allocation10], 1 }
 0x378   :  { %885 = vsyncpa [#allocation8], 1 }

</bundles_post_ra>
